<compile_context>
chip_gen: v7x
topology: tpu7x:2x2x1
jax: 0.10.0
libtpu: 0.0.40
codegen_flags: <defaults>
</compile_context>

<pallas_src>
import functools

import jax
import jax.numpy as jnp
from jax import lax
from jax.experimental import pallas as pl
from jax.experimental.pallas import tpu as pltpu

LANES = 128
SUBLANES = 8
INNER_ROWS = 64                  # rows per inner fori_loop slice (8 f32 vregs/input)
DEFAULT_MAX_TILE_ROWS = 2048     # 1 MiB f32 per input block (safe on v5e's 16 MiB scoped)
V7X_MAX_TILE_ROWS = 4096         # 2 MiB f32 per input block (v7x: ~3.2 TB/s HBM)


def _round_up(x, m):
    return ((x + m - 1) // m) * m


def _device_kind():
    try:
        return jax.devices()[0].device_kind.lower()
    except Exception:  # pragma: no cover - CPU/interpret fallback
        return ""


def _has_two_tensorcores(kind):
    # v7x: 2 TensorCores per chip; v4/v5p megacore also shard a "parallel" axis.
    return any(tag in kind for tag in ("v7", "7x", "v4", "v5p"))


def _max_tile_rows(kind):
    if "v7" in kind or "7x" in kind:
        return V7X_MAX_TILE_ROWS
    return DEFAULT_MAX_TILE_ROWS


def _photon_conservation_kernel(p1_ref, p2_ref, r_ref, t_ref, acc_ref, *,
                                eps: float, tile_rows: int, n_rows_full: int,
                                rem_lanes: int, steps_per_shard: int,
                                last_step: int, mask_mode: int):
    """mask_mode: 0 = never mask, 1 = mask every step, 2 = mask tail step only."""
    shard = pl.program_id(0)
    step = pl.program_id(1)

    @pl.when(step == 0)
    def _():
        acc_ref[...] = jnp.zeros_like(acc_ref)

    global_step = shard * steps_per_shard + step
    block_row0 = global_step * tile_rows
    n_inner = tile_rows // INNER_ROWS

    def tile_sum(masked: bool):
        def body(i, acc):
            r0 = pl.multiple_of(i * INNER_ROWS, INNER_ROWS)
            sl = pl.ds(r0, INNER_ROWS)
            p1 = p1_ref[sl, :].astype(jnp.float32)
            p2 = p2_ref[sl, :].astype(jnp.float32)
            ratio = r_ref[sl, :].astype(jnp.float32)
            total = t_ref[sl, :].astype(jnp.float32)
            pred_total = p1 + p2
            # approx reciprocal runs on the otherwise-idle EUP slot.
            cons = (jnp.abs(p1 * pl.reciprocal(pred_total + eps, approx=True)
                            - ratio)
                    + jnp.abs(pred_total - total))
            if masked:
                # Row-granular compare: no element-index multiply -> no i32 overflow.
                grow = (block_row0 + r0
                        + lax.broadcasted_iota(jnp.int32, (INNER_ROWS, LANES), 0))
                col = lax.broadcasted_iota(jnp.int32, (INNER_ROWS, LANES), 1)
                valid = jnp.logical_or(
                    grow < n_rows_full,
                    jnp.logical_and(grow == n_rows_full, col < rem_lanes))
                cons = jnp.where(valid, cons, 0.0)
            # (INNER_ROWS,128) -> (INNER_ROWS//8,8,128) is a free metadata reshape;
            # sum(axis=0) is vreg-wise VPU adds (no XLU).
            return acc + cons.reshape(INNER_ROWS // SUBLANES, SUBLANES, LANES
                                      ).sum(axis=0)

        return lax.fori_loop(0, n_inner, body,
                             jnp.zeros((SUBLANES, LANES), jnp.float32))

    if mask_mode == 0:
        acc_ref[...] += tile_sum(False)[None]
    elif mask_mode == 1:
        acc_ref[...] += tile_sum(True)[None]
    else:
        is_tail = global_step == last_step

        @pl.when(jnp.logical_not(is_tail))
        def _():
            acc_ref[...] += tile_sum(False)[None]

        @pl.when(is_tail)
        def _():
            acc_ref[...] += tile_sum(True)[None]


def _as_slab(x, rows):
    """View x as a (rows, 128) lane-dense slab in its native dtype.

    Free metadata reshape when x.size == rows*128 (i.e. n % 128 == 0).
    """
    flat = jnp.ravel(x)
    pad = rows * LANES - flat.shape[0]
    if pad:
        # TODO(synk): sizes with n % 128 != 0 still pay one XLA pad copy; a
        # separate scalar tail pass would avoid it but is rarely worth it.
        flat = jnp.pad(flat, (0, pad))
    return flat.reshape(rows, LANES)


def photon_conservation_loss(photons_ch1, photons_ch2, ratio, total_photons,
                             *, weight: float = 1.0, eps: float = 1e-8):
    assert (photons_ch1.shape == photons_ch2.shape ==
            ratio.shape == total_photons.shape)
    n_elems = photons_ch1.size

    kind = _device_kind()
    max_tile = _max_tile_rows(kind)
    multi_tc = _has_two_tensorcores(kind)

    rows = pl.cdiv(n_elems, LANES)                       # slab rows (lane pad only)
    tile_rows = min(max_tile, _round_up(rows, INNER_ROWS))
    steps_total = pl.cdiv(rows, tile_rows)

    # Megacore split only on 2-TensorCore chips, and only with a balanced grid
    # (no clamped duplicate block).
    num_shards = 1
    if multi_tc and steps_total >= 2:
        t, s = tile_rows, steps_total
        while (s % 2) and t > INNER_ROWS:
            t_new = _round_up(pl.cdiv(rows, s + 1), INNER_ROWS)
            if t_new >= t:
                t_new = t - INNER_ROWS
            t = t_new
            s = pl.cdiv(rows, t)
        if s % 2 == 0:
            num_shards = 2
            tile_rows, steps_total = t, s
    steps_per_shard = steps_total // num_shards

    n_rows_full, rem_lanes = divmod(n_elems, LANES)
    has_oob_rows = steps_total * tile_rows > rows        # tail block reads garbage rows
    # Zero-padded lanes contribute exactly 0 when eps > 0; only mask them when
    # eps is (effectively) zero to avoid 0/0 NaNs.
    needs_mask = has_oob_rows or (rem_lanes != 0 and eps < 1e-30)
    if not needs_mask:
        mask_mode = 0
    elif steps_total == 1:
        mask_mode = 1
    else:
        mask_mode = 2                                    # tail step only

    slabs = [_as_slab(x, rows) for x in
             (photons_ch1, photons_ch2, ratio, total_photons)]

    in_spec = pl.BlockSpec((tile_rows, LANES),
                           lambda p, i: (p * steps_per_shard + i, 0))
    out_spec = pl.BlockSpec((1, SUBLANES, LANES), lambda p, i: (p, 0, 0))

    kernel = functools.partial(
        _photon_conservation_kernel,
        eps=float(eps), tile_rows=int(tile_rows),
        n_rows_full=int(n_rows_full), rem_lanes=int(rem_lanes),
        steps_per_shard=int(steps_per_shard), last_step=int(steps_total - 1),
        mask_mode=int(mask_mode))

    bytes_accessed = sum(int(s.size) * s.dtype.itemsize for s in slabs)
    vmem_limit = (sum(2 * tile_rows * LANES * s.dtype.itemsize for s in slabs)
                  + (16 << 20))

    acc = pl.pallas_call(
        kernel,
        out_shape=jax.ShapeDtypeStruct((num_shards, SUBLANES, LANES),
                                       jnp.float32),
        grid_spec=pltpu.PrefetchScalarGridSpec(
            num_scalar_prefetch=0,
            grid=(num_shards, steps_per_shard),
            in_specs=[in_spec, in_spec, in_spec, in_spec],
            out_specs=out_spec),
        compiler_params=pltpu.CompilerParams(
            dimension_semantics=("parallel", "arbitrary"),
            vmem_limit_bytes=int(vmem_limit)),
        cost_estimate=pl.CostEstimate(
            flops=10 * n_elems, transcendentals=n_elems,
            bytes_accessed=bytes_accessed),
    )(*slabs)

    return jnp.float32(weight) * (jnp.sum(acc) * jnp.float32(1.0 / n_elems))


def _reference(p1, p2, ratio, total, weight=1.0, eps=1e-8):
    p1 = p1.astype(jnp.float32)
    p2 = p2.astype(jnp.float32)
    ratio = ratio.astype(jnp.float32)
    total = total.astype(jnp.float32)
    pred_total = p1 + p2
    ratio_cons = jnp.abs(p1 / (p1 + p2 + eps) - ratio)
    total_cons = jnp.abs(pred_total - total)
    return weight * (ratio_cons.mean() + total_cons.mean())


if __name__ == "__main__":
    key = jax.random.PRNGKey(0)

    cases = [
        # (shape, weight): basic NCHW; ragged (pad+mask path); exact single
        # tile; 2-step tail-mask path; multi-step (shard balancing on v7x).
        ((2, 4, 16, 16), 1.0),
        ((3, 5, 7, 9), 0.7),
        ((4, 4, 128, 128), 1.0),
        ((5, 512, 128), 1.3),
        ((5, 1024, 128), 0.9),
    ]

    ok = True
    for shape, weight in cases:
        key, k1, k2, k3, k4 = jax.random.split(key, 5)
        photons_ch1 = jax.random.uniform(k1, shape, jnp.float32, 0.0, 10.0)
        photons_ch2 = jax.random.uniform(k2, shape, jnp.float32, 0.0, 10.0)
        ratio = jax.random.uniform(k3, shape, jnp.float32, 0.0, 1.0)
        total_photons = jax.random.uniform(k4, shape, jnp.float32, 0.0, 20.0)

        loss = photon_conservation_loss(photons_ch1, photons_ch2, ratio,
                                        total_photons, weight=weight, eps=1e-8)
        loss = jax.block_until_ready(loss)

        ref = _reference(photons_ch1, photons_ch2, ratio, total_photons,
                         weight=weight, eps=1e-8)
        # Slightly looser tolerance: approx reciprocal (EUP) vs exact divide.
        if not jnp.allclose(loss, ref, rtol=5e-4, atol=1e-5):
            ok = False
            print("MISMATCH", shape, float(loss), float(ref))

    assert ok
    print("KERNEL_OK")
</pallas_src>

<mosaic_0001>
module attributes {stable_mosaic.version = 11 : i64} {
  func.func @_photon_conservation_kernel(%arg0: i32, %arg1: i32, %arg2: memref<64x128xf32, #tpu.memory_space<vmem>>, %arg3: memref<64x128xf32, #tpu.memory_space<vmem>>, %arg4: memref<64x128xf32, #tpu.memory_space<vmem>>, %arg5: memref<64x128xf32, #tpu.memory_space<vmem>>, %arg6: memref<1x8x128xf32, #tpu.memory_space<vmem>>) attributes {dimension_semantics = [#tpu.dimension_semantics<parallel>, #tpu.dimension_semantics<arbitrary>], iteration_bounds = array<i64: 1, 1>, scalar_prefetch = 0 : i64, scratch_operands = 0 : i64, tpu.core_type = #tpu.core_type<tc>, window_params = [{transform_indices = @transform_0, window_bounds = array<i64: 64, 128>}, {transform_indices = @transform_1, window_bounds = array<i64: 64, 128>}, {transform_indices = @transform_2, window_bounds = array<i64: 64, 128>}, {transform_indices = @transform_3, window_bounds = array<i64: 64, 128>}, {transform_indices = @transform_4, window_bounds = array<i64: 1, 8, 128>}]} {
    %c0_i32 = arith.constant 0 : i32
    %0 = arith.cmpi eq, %arg1, %c0_i32 : i32
    %1 = arith.extui %0 : i1 to i32
    %c0_i32_0 = arith.constant 0 : i32
    %2 = arith.cmpi ne, %1, %c0_i32_0 : i32
    scf.if %2 {
      %cst_18 = arith.constant 0.000000e+00 : f32
      %49 = vector.broadcast %cst_18 : f32 to vector<1x8x128xf32>
      %c0_19 = arith.constant 0 : index
      %c0_20 = arith.constant 0 : index
      %c0_21 = arith.constant 0 : index
      %50 = vector.load %arg6[%c0_19, %c0_20, %c0_21] : memref<1x8x128xf32, #tpu.memory_space<vmem>>, vector<1x8x128xf32>
      tpu.vector_store %arg6[%c0_19, %c0_20, %c0_21], %49 {strides = array<i32>} : memref<1x8x128xf32, #tpu.memory_space<vmem>>, vector<1x8x128xf32>,
    } else {
    }
    %c1_i32 = arith.constant 1 : i32
    %3 = arith.muli %arg0, %c1_i32 : i32
    %4 = arith.addi %3, %arg1 : i32
    %c64_i32 = arith.constant 64 : i32
    %5 = arith.muli %4, %c64_i32 : i32
    %c0 = arith.constant 0 : index
    %c0_1 = arith.constant 0 : index
    %c0_2 = arith.constant 0 : index
    %6 = vector.load %arg6[%c0, %c0_1, %c0_2] : memref<1x8x128xf32, #tpu.memory_space<vmem>>, vector<1x8x128xf32>
    %cst = arith.constant 0.000000e+00 : f32
    %7 = vector.broadcast %cst : f32 to vector<8x128xf32>
    %c0_i32_3 = arith.constant 0 : i32
    %c64_i32_4 = arith.constant 64 : i32
    %8 = arith.muli %c0_i32_3, %c64_i32_4 : i32
    %9 = tpu.assume_multiple %8, 64 : i32
    %10 = arith.index_cast %9 : i32 to index
    %c0_5 = arith.constant 0 : index
    %11 = vector.load %arg2[%10, %c0_5] : memref<64x128xf32, #tpu.memory_space<vmem>>, vector<64x128xf32>
    %12 = arith.index_cast %9 : i32 to index
    %c0_6 = arith.constant 0 : index
    %13 = vector.load %arg3[%12, %c0_6] : memref<64x128xf32, #tpu.memory_space<vmem>>, vector<64x128xf32>
    %14 = arith.index_cast %9 : i32 to index
    %c0_7 = arith.constant 0 : index
    %15 = vector.load %arg4[%14, %c0_7] : memref<64x128xf32, #tpu.memory_space<vmem>>, vector<64x128xf32>
    %16 = arith.index_cast %9 : i32 to index
    %c0_8 = arith.constant 0 : index
    %17 = vector.load %arg5[%16, %c0_8] : memref<64x128xf32, #tpu.memory_space<vmem>>, vector<64x128xf32>
    %18 = arith.addf %11, %13 : vector<64x128xf32>
    %cst_9 = arith.constant 9.99999993E-9 : f32
    %19 = vector.broadcast %cst_9 : f32 to vector<64x128xf32>
    %20 = arith.addf %18, %19 : vector<64x128xf32>
    %21 = tpu.reciprocal %20 {approx = true} : vector<64x128xf32> -> vector<64x128xf32>
    %22 = arith.mulf %11, %21 : vector<64x128xf32>
    %23 = arith.subf %22, %15 : vector<64x128xf32>
    %24 = math.absf %23 : vector<64x128xf32>
    %25 = arith.subf %18, %17 : vector<64x128xf32>
    %26 = math.absf %25 : vector<64x128xf32>
    %27 = arith.addf %24, %26 : vector<64x128xf32>
    %28 = arith.addi %5, %9 : i32
    %29 = tpu.iota {dimensions = array<i32: 0>} : vector<64x128xi32>
    %30 = vector.broadcast %28 : i32 to vector<64x128xi32>
    %31 = arith.addi %30, %29 : vector<64x128xi32>
    %32 = tpu.iota {dimensions = array<i32: 1>} : vector<64x128xi32>
    %c16_i32 = arith.constant 16 : i32
    %33 = vector.broadcast %c16_i32 : i32 to vector<64x128xi32>
    %34 = arith.cmpi slt, %31, %33 : vector<64x128xi32>
    %c16_i32_10 = arith.constant 16 : i32
    %35 = vector.broadcast %c16_i32_10 : i32 to vector<64x128xi32>
    %36 = arith.cmpi eq, %31, %35 : vector<64x128xi32>
    %c0_i32_11 = arith.constant 0 : i32
    %37 = vector.broadcast %c0_i32_11 : i32 to vector<64x128xi32>
    %38 = arith.cmpi slt, %32, %37 : vector<64x128xi32>
    %39 = arith.andi %36, %38 : vector<64x128xi1>
    %40 = arith.ori %34, %39 : vector<64x128xi1>
    %cst_12 = arith.constant 0.000000e+00 : f32
    %41 = vector.broadcast %cst_12 : f32 to vector<64x128xf32>
    %42 = arith.select %40, %27, %41 : vector<64x128xi1>, vector<64x128xf32>
    %43 = vector.shape_cast %42 : vector<64x128xf32> to vector<8x8x128xf32>
    %cst_13 = arith.constant dense<0.000000e+00> : vector<8x128xf32>
    %44 = vector.multi_reduction <add>, %43, %cst_13 [0] : vector<8x8x128xf32> to vector<8x128xf32>
    %45 = arith.addf %7, %44 : vector<8x128xf32>
    %c1_i32_14 = arith.constant 1 : i32
    %46 = vector.shape_cast %45 : vector<8x128xf32> to vector<1x8x128xf32>
    %47 = arith.addf %6, %46 : vector<1x8x128xf32>
    %c0_15 = arith.constant 0 : index
    %c0_16 = arith.constant 0 : index
    %c0_17 = arith.constant 0 : index
    %48 = vector.load %arg6[%c0_15, %c0_16, %c0_17] : memref<1x8x128xf32, #tpu.memory_space<vmem>>, vector<1x8x128xf32>
    tpu.vector_store %arg6[%c0_15, %c0_16, %c0_17], %47 {strides = array<i32>} : memref<1x8x128xf32, #tpu.memory_space<vmem>>, vector<1x8x128xf32>,
    return
  }
  func.func @transform_0(%arg0: i32, %arg1: i32) -> (i32, i32) {
    %c1_i32 = arith.constant 1 : i32
    %0 = arith.muli %arg0, %c1_i32 : i32
    %1 = arith.addi %0, %arg1 : i32
    %c0_i32 = arith.constant 0 : i32
    %c0_i32_0 = arith.constant 0 : i32
    return %1, %c0_i32 : i32, i32
  }
  func.func @transform_1(%arg0: i32, %arg1: i32) -> (i32, i32) {
    %c1_i32 = arith.constant 1 : i32
    %0 = arith.muli %arg0, %c1_i32 : i32
    %1 = arith.addi %0, %arg1 : i32
    %c0_i32 = arith.constant 0 : i32
    %c0_i32_0 = arith.constant 0 : i32
    return %1, %c0_i32 : i32, i32
  }
  func.func @transform_2(%arg0: i32, %arg1: i32) -> (i32, i32) {
    %c1_i32 = arith.constant 1 : i32
    %0 = arith.muli %arg0, %c1_i32 : i32
    %1 = arith.addi %0, %arg1 : i32
    %c0_i32 = arith.constant 0 : i32
    %c0_i32_0 = arith.constant 0 : i32
    return %1, %c0_i32 : i32, i32
  }
  func.func @transform_3(%arg0: i32, %arg1: i32) -> (i32, i32) {
    %c1_i32 = arith.constant 1 : i32
    %0 = arith.muli %arg0, %c1_i32 : i32
    %1 = arith.addi %0, %arg1 : i32
    %c0_i32 = arith.constant 0 : i32
    %c0_i32_0 = arith.constant 0 : i32
    return %1, %c0_i32 : i32, i32
  }
  func.func @transform_4(%arg0: i32, %arg1: i32) -> (i32, i32, i32) {
    %c0_i32 = arith.constant 0 : i32
    %c0_i32_0 = arith.constant 0 : i32
    %c0_i32_1 = arith.constant 0 : i32
    return %arg0, %c0_i32, %c0_i32_0 : i32, i32, i32
  }
}

</mosaic_0001>

<bundles_post_ra>
// kernel: tpu_custom_call.1
= control target key start
LH: loop header
LB: loop body
LE: loop exit
PB: predicated region body
PF: predicated region fallthrough
CT: control target
= control target key end

     0   :  { %9 = vsyncpa [#allocation3], 0  ;;  %s556_s0 = inlined_call_operand.hbm [shape: f32[16,128], index: 0, kind: input, shape index: {}]   ;;  %s557_s1 = inlined_call_operand.hbm [shape: f32[16,128], index: 1, kind: input, shape index: {}]   ;;  %s558_s2 = inlined_call_operand.hbm [shape: f32[16,128], index: 2, kind: input, shape index: {}]   ;;  %s559_s3 = inlined_call_operand.hbm [shape: f32[16,128], index: 3, kind: input, shape index: {}]   ;;  %s560_s4 = inlined_call_operand.hbm [shape: f32[1,8,128], index: 4, kind: output, shape index: {}]  }
   0x1   :  { %10 = vsyncpa [#allocation6], 0 }
   0x2   :  { %11 = vsyncpa [#allocation9], 0 }
   0x3   :  { %12 = vsyncpa [#allocation4], 0 }
   0x4   :  { %21 = vsyncadd [#allocation3], 768  ;;  %s452_s15 = smov [#allocation2]   ;;  %s334_s19 = scalar_lea.hbm %s556_s0, 256 }
   0x5   :  { %s26_s16 = sshll.u32 %s452_s15, 4  ;;  %p335_p0 = scmp.ne.s32.totalorder %s556_s0, %s334_s19  ;;  %s27_s16 = int_to_ptr.vmem [resolvable:$true] %s26_s16 }
   0x6   :  { %p338_p1 = scmp.lt.u32.totalorder %s334_s19, %s556_s0 }
   0x8   :  { %p340_p2 = pnand %p338_p1, %p335_p0 }
   0xa   :  { %343 = shalt.err (!%p340_p2)
}
   0xb   :  { %s344_s24 = scalar_lea.vmem %s27_s16, 256  ;;  %s348_s25 = scalar_lea.vmem %s27_s16, 1024 }
   0xc   :  { %p345_p3 = scmp.ne.s32.totalorder %s27_s16, %s344_s24  ;;  %p349_p4 = scmp.lt.s32.totalorder %s27_s16, %s27_s16 }
   0xd   :  { %p350_p5 = scmp.lt.s32.totalorder %s348_s25, %s344_s24 }
   0xf   :  { %p351_p6 = por %p350_p5, %p349_p4 }
  0x11   :  { %p352_p7 = pnand %p351_p6, %p345_p3 }
  0x13   :  { %355 = shalt.err (!%p352_p7)
}
  0x14   :  { %s453_s26 = smov 128   ;;  %s454_s27 = smov 8  }
  0x15   :  { %32 = dma.hbm_to_vmem [thread:$0]  %s556_s0, 256, %s27_s16, [#allocation3], %s453_s26, %s453_s26, %s454_s27  }
  0x16   :  { %41 = vsyncadd [#allocation6], 768  ;;  %s455_s30 = smov [#allocation5]   ;;  %s356_s8 = scalar_lea.hbm %s557_s1, 256 }
  0x17   :  { %s46_s5 = sshll.u32 %s455_s30, 4  ;;  %p357_p8 = scmp.ne.s32.totalorder %s557_s1, %s356_s8  ;;  %s47_s5 = int_to_ptr.vmem [resolvable:$true] %s46_s5 }
  0x18   :  { %p360_p9 = scmp.lt.u32.totalorder %s356_s8, %s557_s1 }
  0x1a   :  { %p362_p10 = pnand %p360_p9, %p357_p8 }
  0x1c   :  { %365 = shalt.err (!%p362_p10)
}
  0x1d   :  { %s366_s13 = scalar_lea.vmem %s47_s5, 256  ;;  %s370_s0 = scalar_lea.vmem %s47_s5, 1024 }
  0x1e   :  { %p367_p11 = scmp.ne.s32.totalorder %s47_s5, %s366_s13  ;;  %p371_p12 = scmp.lt.s32.totalorder %s47_s5, %s47_s5 }
  0x1f   :  { %p372_p13 = scmp.lt.s32.totalorder %s370_s0, %s366_s13 }
  0x21   :  { %p373_p0 = por %p372_p13, %p371_p12 }
  0x23   :  { %p374_p1 = pnand %p373_p0, %p367_p11 }
  0x25   :  { %377 = shalt.err (!%p374_p1)
}
  0x26   :  { %52 = dma.hbm_to_vmem [thread:$0]  %s557_s1, 256, %s47_s5, [#allocation6], %s453_s26, %s453_s26, %s454_s27  }
  0x27   :  { %61 = vsyncadd [#allocation6], 768  ;;  %s456_s16 = smov [#allocation7]   ;;  %s378_s20 = scalar_lea.hbm %s558_s2, 256 }
  0x28   :  { %s66_s17 = sshll.u32 %s456_s16, 4  ;;  %p379_p2 = scmp.ne.s32.totalorder %s558_s2, %s378_s20  ;;  %s67_s17 = int_to_ptr.vmem [resolvable:$true] %s66_s17 }
  0x29   :  { %p382_p3 = scmp.lt.u32.totalorder %s378_s20, %s558_s2 }
  0x2b   :  { %p384_p4 = pnand %p382_p3, %p379_p2 }
  0x2d   :  { %387 = shalt.err (!%p384_p4)
}
  0x2e   :  { %s388_s25 = scalar_lea.vmem %s67_s17, 256  ;;  %s392_s1 = scalar_lea.vmem %s67_s17, 1024 }
  0x2f   :  { %p389_p5 = scmp.ne.s32.totalorder %s67_s17, %s388_s25  ;;  %p393_p6 = scmp.lt.s32.totalorder %s67_s17, %s67_s17 }
  0x30   :  { %p394_p7 = scmp.lt.s32.totalorder %s392_s1, %s388_s25 }
  0x32   :  { %p395_p8 = por %p394_p7, %p393_p6 }
  0x34   :  { %p396_p9 = pnand %p395_p8, %p389_p5 }
  0x36   :  { %399 = shalt.err (!%p396_p9)
}
  0x37   :  { %72 = dma.hbm_to_vmem [thread:$0]  %s558_s2, 256, %s67_s17, [#allocation6], %s453_s26, %s453_s26, %s454_s27  }
  0x38   :  { %81 = vsyncadd [#allocation9], 768  ;;  %s457_s30 = smov [#allocation8]   ;;  %s400_s8 = scalar_lea.hbm %s559_s3, 256 }
  0x39   :  { %s86_s5 = sshll.u32 %s457_s30, 4  ;;  %p401_p10 = scmp.ne.s32.totalorder %s559_s3, %s400_s8  ;;  %s87_s5 = int_to_ptr.vmem [resolvable:$true] %s86_s5 }
  0x3a   :  { %p404_p11 = scmp.lt.u32.totalorder %s400_s8, %s559_s3 }
  0x3c   :  { %p406_p12 = pnand %p404_p11, %p401_p10 }
  0x3e   :  { %409 = shalt.err (!%p406_p12)
}
  0x3f   :  { %s410_s13 = scalar_lea.vmem %s87_s5, 256  ;;  %s414_s2 = scalar_lea.vmem %s87_s5, 1024 }
  0x40   :  { %p411_p13 = scmp.ne.s32.totalorder %s87_s5, %s410_s13  ;;  %p415_p0 = scmp.lt.s32.totalorder %s87_s5, %s87_s5 }
  0x41   :  { %p416_p1 = scmp.lt.s32.totalorder %s414_s2, %s410_s13 }
  0x43   :  { %p417_p2 = por %p416_p1, %p415_p0 }
  0x45   :  { %p418_p3 = pnand %p417_p2, %p411_p13 }
  0x47   :  { %421 = shalt.err (!%p418_p3)
}
  0x48   :  { %92 = dma.hbm_to_vmem [thread:$0]  %s559_s3, 256, %s87_s5, [#allocation9], %s453_s26, %s453_s26, %s454_s27  }
  0x49   :  { %444 = dma.done.wait [#allocation3], 1024  }
  0x4a   :  { %445 = vsyncadd [#allocation3], 4294966272 }
  0x4b   :  { %446 = dma.done.wait [#allocation6], 2048  }
  0x4c   :  { %447 = vsyncadd [#allocation6], 4294965248 }
  0x4d   :  { %448 = dma.done.wait [#allocation9], 1024  }
  0x4e   :  { %449 = vsyncadd [#allocation9], 4294966272  ;;  %v129_v0 = vld [vmem:[#allocation2] sm:$0xff]  ;;  %v130_v1 = vld [vmem:[#allocation2 + $0x8] sm:$0xff]  ;;  %s458_s3 = smov [#allocation10]  }
  0x4f   :  { %v137_v2 = vld [vmem:[#allocation5] sm:$0xff]  ;;  %v138_v3 = vld [vmem:[#allocation5 + $0x8] sm:$0xff]  ;;  %s311_s26 = sshll.u32 %s458_s3, 4  ;;  %s312_s26 = int_to_ptr.vmem [resolvable:$true] %s311_s26 }
  0x50   :  { %v161_v4 = vadd.f32 %v137_v2, %v129_v0  ;;  %v162_v5 = vadd.f32 %v138_v3, %v130_v1  ;;  %v153_v8 = vld [vmem:[#allocation8] sm:$0xff]  ;;  %v154_v9 = vld [vmem:[#allocation8 + $0x8] sm:$0xff]  ;;  %s422_s27 = scalar_lea.vmem %s312_s26, 128  ;;  %p427_p5 = scmp.lt.s32.totalorder %s312_s26, %s312_s26 }
  0x51   :  { %v145_v12 = vld [vmem:[#allocation7] sm:$0xff]  ;;  %v146_v15 = vld [vmem:[#allocation7 + $0x8] sm:$0xff]  ;;  %p423_p4 = scmp.ne.s32.totalorder %s312_s26, %s422_s27  ;;  %p428_p6 = scmp.lt.s32.totalorder %s422_s27, %s422_s27 }
  0x52   :  { %v169_v6 = vadd.f32 1e-08, %v161_v4  ;;  %v170_v7 = vadd.f32 1e-08, %v162_v5  ;;  %v209_v10 = vsub.f32 %v161_v4, %v153_v8  ;;  %v210_v13 = vsub.f32 %v162_v5, %v154_v9 }
  0x53   :  { %p429_p7 = por %p428_p6, %p427_p5 }
  0x54   :  { %330 = vrcp.f32 %v169_v6  ;;  %v217_v19 = vand.u32 2147483647, %v209_v10  ;;  %v218_v21 = vand.u32 2147483647, %v210_v13 }
  0x55   :  { %332 = vrcp.f32 %v170_v7  ;;  %p430_p8 = pnand %p429_p7, %p423_p4 }
  0x5e   :  { %v331_v11 = vpop.eup %330 }
  0x5f   :  { %v333_v14 = vpop.eup %332  ;;  %v185_v16 = vmul.f32 %v331_v11, %v129_v0 }
  0x60   :  { %v186_v17 = vmul.f32 %v333_v14, %v130_v1 }
  0x61   :  { %v193_v18 = vsub.f32 %v185_v16, %v145_v12 }
  0x62   :  { %v194_v20 = vsub.f32 %v186_v17, %v146_v15 }
  0x63   :  { %v201_v22 = vand.u32 2147483647, %v193_v18 }
  0x64   :  { %v202_v23 = vand.u32 2147483647, %v194_v20 }
  0x65   :  { %v225_v24 = vadd.f32 %v217_v19, %v201_v22 }
  0x66   :  { %v226_v25 = vadd.f32 %v218_v21, %v202_v23 }
  0x68   :  { %v295_v26 = vadd.f32 %v226_v25, %v225_v24 }
  0x6a   :  { %304 = vst [vmem:[#allocation10] sm:$0xff] %v295_v26 }
  0x6b   :  { %433 = shalt.err (!%p430_p8)
}
  0x6c   :  { %s434_s17 = scalar_lea.hbm %s560_s4, 128 }
  0x6d   :  { %p435_p9 = scmp.ne.s32.totalorder %s560_s4, %s434_s17  ;;  %p438_p10 = scmp.lt.u32.totalorder %s434_s17, %s560_s4 }
  0x6f   :  { %p440_p11 = pnand %p438_p10, %p435_p9 }
  0x71   :  { %443 = shalt.err (!%p440_p11)
}
  0x72   :  { %314 = dma.vmem_to_hbm [thread:$0]  %s312_s26, 128, %s560_s4, [#allocation4]  }
  0x73   :  { %450 = dma.done.wait [#allocation4], 128  }
  0x74   :  { %451 = vsyncadd [#allocation4], 4294967168 }
  0x75   :  { %318 = vsyncpa [#allocation3], 1 }
  0x76   :  { %319 = vsyncpa [#allocation6], 1 }
  0x77   :  { %320 = vsyncpa [#allocation9], 1 }
  0x78   :  { %321 = vsyncpa [#allocation4], 1 }

</bundles_post_ra>
